<compile_context>
chip_gen: v7x
topology: tpu7x:2x2x1
jax: 0.10.0
libtpu: 0.0.40
codegen_flags: <defaults>
</compile_context>

<pallas_src>
import functools

import jax
import jax.numpy as jnp
from jax.experimental import pallas as pl
from jax.experimental.pallas import tpu as pltpu


def _round_up(x, m):
    return ((x + m - 1) // m) * m


def _conv1x1_kernel(x_ref, w_ref, b_ref, o_ref):
    # x_ref: (1, Cin, tile_s)   streaming input tile
    # w_ref: (Cout, Cin)        resident weight (constant index_map)
    # b_ref: (Cout, 1)          resident bias
    # o_ref: (1, Cout, tile_s)  streaming output tile (lane-dense last dim)
    acc = jnp.dot(w_ref[...], x_ref[0], preferred_element_type=jnp.float32)
    # Bias add / cast stay in f32 (safe on v5e, which has no bf16 VPU path).
    o_ref[0] = (acc + b_ref[...].astype(jnp.float32)).astype(o_ref.dtype)


def _pick_tile_s(S, Cin, Cout, itemsize, max_tile_s=1024,
                 vmem_budget=12 * 1024 * 1024):
    """Spatial tile: multiple of 128 lanes, capped, fits double-buffered VMEM.

    Budget of ~12 MiB keeps us inside the *default* scoped VMEM even on v5e
    (16 MiB) and well inside v7x's 64 MiB physical VMEM, so no vmem_limit_bytes
    override is needed.
    """
    if S <= 128:
        return S
    tile_s = max(128, (min(max_tile_s, S) // 128) * 128)

    def est(ts):
        # 2x-buffered x tile + 2x-buffered out tile + resident weight/bias.
        return (2 * ts * Cin * itemsize + 2 * ts * Cout * itemsize
                + Cout * Cin * itemsize + Cout * 4)

    while tile_s > 128 and est(tile_s) > vmem_budget:
        tile_s -= 128
    return tile_s


@functools.partial(jax.jit, static_argnames=("max_tile_s",))
def _skip_conv1x1(x, w, b, *, max_tile_s=1024):
    """x: (N, Cin, H, W); w: (Cout, Cin); b: (Cout,). Returns (N, Cout, H, W)."""
    N, Cin, H, W = x.shape
    Cout = w.shape[0]
    S = H * W

    x3 = x.reshape(N, Cin, S)                      # free reshape of NCHW
    tile_s = _pick_tile_s(S, Cin, Cout, x.dtype.itemsize, max_tile_s)
    S_pad = _round_up(S, tile_s)
    if S_pad != S:                                 # ragged spatial: pad once
        x3 = jnp.pad(x3, ((0, 0), (0, 0), (0, S_pad - S)))

    grid = (N, S_pad // tile_s)

    out3 = pl.pallas_call(
        _conv1x1_kernel,
        out_shape=jax.ShapeDtypeStruct((N, Cout, S_pad), x.dtype),
        grid_spec=pltpu.PrefetchScalarGridSpec(
            num_scalar_prefetch=0,
            grid=grid,
            in_specs=[
                pl.BlockSpec((1, Cin, tile_s), lambda n, s: (n, 0, s)),
                pl.BlockSpec((Cout, Cin), lambda n, s: (0, 0)),
                pl.BlockSpec((Cout, 1), lambda n, s: (0, 0)),
            ],
            out_specs=pl.BlockSpec((1, Cout, tile_s), lambda n, s: (n, 0, s)),
        ),
        compiler_params=pltpu.CompilerParams(
            dimension_semantics=("parallel", "parallel"),
        ),
    )(x3, w, b.reshape(Cout, 1))

    if S_pad != S:
        out3 = out3[:, :, :S]
    return out3.reshape(N, Cout, H, W)


class SkipLayerPallas:
    """JAX/Pallas port of SkipLayer: identity if inC == outC, else 1x1 conv."""

    def __init__(self, in_channels, out_channels, key):
        self.in_channels = in_channels
        self.out_channels = out_channels
        if in_channels == out_channels:
            self.weight = None
            self.bias = None
        else:
            kw, kb = jax.random.split(key)
            # Init mimicking PyTorch Conv2d default:
            # uniform in [-1/sqrt(fan_in), 1/sqrt(fan_in)], fan_in = inC*1*1.
            bound = 1.0 / jnp.sqrt(jnp.float32(in_channels))
            # weight shape matches nn.Conv2d(inC, outC, 1): (outC, inC, 1, 1)
            self.weight = jax.random.uniform(
                kw, (out_channels, in_channels, 1, 1),
                minval=-bound, maxval=bound, dtype=jnp.float32)
            self.bias = jax.random.uniform(
                kb, (out_channels,),
                minval=-bound, maxval=bound, dtype=jnp.float32)

    def __call__(self, x):
        # x: (N, Cin, H, W) -- NCHW, same as PyTorch
        if self.weight is None:
            return x  # identity branch, no compute
        w = self.weight.reshape(self.out_channels, self.in_channels)
        return _skip_conv1x1(x, w, self.bias)


if __name__ == "__main__":
    key = jax.random.PRNGKey(0)
    k_x, k_x2, k_params = jax.random.split(key, 3)

    # Case 1: inChannels != outChannels -> 1x1 conv via the Pallas kernel.
    N, Cin, H, W = 2, 4, 16, 16
    Cout = 8
    x = jax.random.normal(k_x, (N, Cin, H, W), dtype=jnp.float32)

    layer = SkipLayerPallas(Cin, Cout, k_params)
    y = jax.block_until_ready(layer(x))
    assert y.shape == (N, Cout, H, W), y.shape

    w2 = layer.weight.reshape(Cout, Cin)
    ref = jnp.einsum("nchw,oc->nohw", x, w2) + layer.bias.reshape(1, Cout, 1, 1)
    assert jnp.allclose(y, ref, atol=1e-5, rtol=1e-5), "mismatch vs reference"

    # Case 2: ragged spatial size (H*W not a multiple of 128) exercises the
    # pad-and-slice path.
    H2, W2 = 15, 15
    x2 = jax.random.normal(k_x2, (N, Cin, H2, W2), dtype=jnp.float32)
    y2 = jax.block_until_ready(layer(x2))
    assert y2.shape == (N, Cout, H2, W2), y2.shape
    ref2 = jnp.einsum("nchw,oc->nohw", x2, w2) + layer.bias.reshape(1, Cout, 1, 1)
    assert jnp.allclose(y2, ref2, atol=1e-5, rtol=1e-5), "ragged mismatch"

    # Case 3: inChannels == outChannels -> identity, no kernel launch.
    id_layer = SkipLayerPallas(Cin, Cin, k_params)
    y_id = jax.block_until_ready(id_layer(x))
    assert y_id.shape == x.shape
    assert jnp.allclose(y_id, x)

    print("KERNEL_OK")
</pallas_src>

<mosaic_0001>
module attributes {stable_mosaic.version = 11 : i64} {
  func.func @_conv1x1_kernel(%arg0: i32, %arg1: i32, %arg2: memref<1x4x256xf32, #tpu.memory_space<vmem>>, %arg3: memref<8x4xf32, #tpu.memory_space<vmem>>, %arg4: memref<8x1xf32, #tpu.memory_space<vmem>>, %arg5: memref<1x8x256xf32, #tpu.memory_space<vmem>>) attributes {dimension_semantics = [#tpu.dimension_semantics<parallel>, #tpu.dimension_semantics<parallel>], iteration_bounds = array<i64: 2, 1>, scalar_prefetch = 0 : i64, scratch_operands = 0 : i64, tpu.core_type = #tpu.core_type<tc>, window_params = [{transform_indices = @transform_0, window_bounds = array<i64: 1, 4, 256>}, {pipeline_mode = #tpu.pipeline_mode<synchronous>, transform_indices = @transform_1, window_bounds = array<i64: 8, 4>}, {pipeline_mode = #tpu.pipeline_mode<synchronous>, transform_indices = @transform_2, window_bounds = array<i64: 8, 1>}, {transform_indices = @transform_3, window_bounds = array<i64: 1, 8, 256>}]} {
    %c0 = arith.constant 0 : index
    %c0_0 = arith.constant 0 : index
    %0 = vector.load %arg3[%c0, %c0_0] : memref<8x4xf32, #tpu.memory_space<vmem>>, vector<8x4xf32>
    %c0_1 = arith.constant 0 : index
    %c0_2 = arith.constant 0 : index
    %c0_3 = arith.constant 0 : index
    %1 = vector.load %arg2[%c0_1, %c0_2, %c0_3] : memref<1x4x256xf32, #tpu.memory_space<vmem>>, vector<1x4x256xf32>
    %2 = vector.shape_cast %1 : vector<1x4x256xf32> to vector<4x256xf32>
    %cst = arith.constant dense<0.000000e+00> : vector<8x256xf32>
    %3 = tpu.matmul %0, %2, %cst {dimension_numbers = #tpu.dot_dimension_numbers<[1], [0], [0], [1], [0, 0, 1, 1], [], []>} : vector<8x4xf32>, vector<4x256xf32>, vector<8x256xf32> -> vector<8x256xf32>
    %c0_4 = arith.constant 0 : index
    %c0_5 = arith.constant 0 : index
    %4 = vector.load %arg4[%c0_4, %c0_5] : memref<8x1xf32, #tpu.memory_space<vmem>>, vector<8x1xf32>
    %5 = vector.broadcast %4 : vector<8x1xf32> to vector<8x256xf32>
    %6 = arith.addf %3, %5 : vector<8x256xf32>
    %c0_6 = arith.constant 0 : index
    %c0_7 = arith.constant 0 : index
    %c0_8 = arith.constant 0 : index
    %7 = vector.load %arg5[%c0_6, %c0_7, %c0_8] : memref<1x8x256xf32, #tpu.memory_space<vmem>>, vector<1x8x256xf32>
    %8 = vector.shape_cast %7 : vector<1x8x256xf32> to vector<8x256xf32>
    %9 = vector.shape_cast %6 : vector<8x256xf32> to vector<1x8x256xf32>
    tpu.vector_store %arg5[%c0_6, %c0_7, %c0_8], %9 {strides = array<i32>} : memref<1x8x256xf32, #tpu.memory_space<vmem>>, vector<1x8x256xf32>,
    return
  }
  func.func @transform_0(%arg0: i32, %arg1: i32) -> (i32, i32, i32) {
    %c0_i32 = arith.constant 0 : i32
    %c0_i32_0 = arith.constant 0 : i32
    return %arg0, %c0_i32, %arg1 : i32, i32, i32
  }
  func.func @transform_1(%arg0: i32, %arg1: i32) -> (i32, i32) {
    %c0_i32 = arith.constant 0 : i32
    %c0_i32_0 = arith.constant 0 : i32
    %c0_i32_1 = arith.constant 0 : i32
    return %c0_i32, %c0_i32_0 : i32, i32
  }
  func.func @transform_2(%arg0: i32, %arg1: i32) -> (i32, i32) {
    %c0_i32 = arith.constant 0 : i32
    %c0_i32_0 = arith.constant 0 : i32
    %c0_i32_1 = arith.constant 0 : i32
    return %c0_i32, %c0_i32_0 : i32, i32
  }
  func.func @transform_3(%arg0: i32, %arg1: i32) -> (i32, i32, i32) {
    %c0_i32 = arith.constant 0 : i32
    %c0_i32_0 = arith.constant 0 : i32
    return %arg0, %c0_i32, %arg1 : i32, i32, i32
  }
}

</mosaic_0001>

<bundles_post_ra>
// kernel: _skip_conv1x1.1
= control target key start
LH: loop header
LB: loop body
LE: loop exit
PB: predicated region body
PF: predicated region fallthrough
CT: control target
= control target key end

     0   :  { %s479_s12 = smov 0   ;;  %s481_s13 = smov 0   ;;  %s518_s0 = inlined_call_operand.vmem [shape: f32[2,4,256], index: 0, kind: input, shape index: {}]   ;;  %s519_s1 = inlined_call_operand.vmem [shape: f32[8,4], index: 1, kind: input, shape index: {}]   ;;  %s520_s2 = inlined_call_operand.vmem [shape: f32[8,1], index: 2, kind: input, shape index: {}]   ;;  %s521_s3 = inlined_call_operand.vmem [shape: f32[2,8,256], index: 3, kind: output, shape index: {}]  }
   0x1   :  { %s483_s14 = smov 0  }
   0x2 LB: > { %s25_s15 = sadd.s32 1, %s451_s13  ;;  %p393_p0 = scmp.ge.s32.totalorder %s455_s14, 1  ;;  %s455_s14 = sphi %s483_s14, %s13_s14   ;;  %s451_s13 = sphi %s481_s13, %s523_s13   ;;  %s447_s12 = sphi %s479_s12, %s522_s12  }
   0x3   : > { %p27_p1 = scmp.ge.s32.totalorder %s25_s15, 2  ;;  %p158_p2 = scmp.lt.s32.totalorder %s455_s14, 3 }
   0x5   : > { %s525_s15 = smov (%p27_p1, %s25_s15), 0  ;;  %p159_p3 = pnand %p393_p0, %p158_p2 }
   0x6   : > { %p191_p4 = scmp.lt.s32.totalorder (!%p159_p3), %s447_s12, 1  ;;  %v457_v0 = vmov (!%p159_p3), 0.0   ;;  %v458_v1 = vmov (!%p159_p3), 0   ;;  %v212_v2 = vld [vmem:[%s520_s2] sm:$0xff] (!%p159_p3)  ;;  %vm224_vm0 = vcmask (!%p159_p3), 1043456   ;;  %vm220_vm1 = vcmask (!%p159_p3), 31744  }
   0x7   : > { %162 = sbr.rel (%p159_p3) target bundleno = 238 (0xee), region = 32  ;;  %293 = vmatprep.mubr.f32.mxu0 (!%p159_p3), %v457_v0  ;;  %431 = vset.pattern.permute.xlu0 (!%p159_p3), %v458_v1  ;;  %v210_v5 = vld [vmem:[%s519_s1] sm:$0xff] (!%p159_p3) }
   0x8   : > { %215 = vperm.xlu0 (!%p159_p3), %431, %v212_v2  }
   0xe   : > { %s527_s12 = smov (!%p191_p4, %s447_s12), 1 }
   0xf   : > { %s403_s18 = sshll.u32 %s527_s12, 3  ;;  %s404_s24 = sshll.u32 %s527_s12, 4 }
  0x10   : > { %s198_s21 = scalar_lea.vmem %s518_s0, %s403_s18  ;;  %s208_s27 = scalar_lea.vmem %s521_s3, %s404_s24 }
  0x11   : > { %v211_v3 = vld [vmem:[%s198_s21] sm:$0xff] }
  0x12   : > { %v219_v4 = vcombine.high %v211_v3, %v211_v3 }
  0x14   : > { %398 = vmatprep.subr.msk.mxu0 %vm224_vm0, %v219_v4 }
  0x15   : > { %399 = vmatpush1.msk.msra.mxu0 %vm224_vm0, %v211_v3 }
  0x16   : > { %400 = vmatmul.mubr.msk.f32.vlgmr.msra.gmra.mrb[0].mxu0 %vm220_vm1, %v210_v5 }
  0x87   : > { %v216_v6 = vpop.permute.xlu0 %215 }
  0xe9   : > { %v295_v7 = vpop.f32.mrb[0].mxu0 }
  0xea   : > { %v296_v8 = vadd.f32 %v295_v7, %v216_v6  ;;  %v297_v9 = vpop.f32.mrb[1].mxu0 }
  0xeb   : > { %v298_v10 = vadd.f32 %v297_v9, %v216_v6 }
  0xec   : > { %300 = vst [vmem:[%s208_s27] sm:$0xff] %v296_v8 }
  0xed   : > { %301 = vst [vmem:[%s208_s27 + $0x8] sm:$0xff] %v298_v10 }
  0xee PF: > { %s13_s14 = sadd.s32 1, %s455_s14   ;;  %s522_s12 = smov %s451_s13 }
  0xef   : > { %p10_p5 = scmp.ge.s32.totalorder %s13_s14, 4   ;;  %s523_s13 = smov %s525_s15 }
  0xf1   :  { %12 = sbr.rel (!%p10_p5) target bundleno = 2 (0x2), region = 62 }

</bundles_post_ra>
